<compile_context>
chip_gen: v7x
topology: tpu7x:2x2x1
jax: 0.10.0
libtpu: 0.0.40
codegen_flags: <defaults>
</compile_context>

<pallas_src>
import functools

import jax
import jax.numpy as jnp
from jax.experimental import pallas as pl
from jax.experimental.pallas import tpu as pltpu


def _round_up(x: int, m: int) -> int:
    return ((x + m - 1) // m) * m


def _nice_tile(x: int) -> int:
    """Round a row-tile candidate down to an MXU/sublane-friendly size (>=8)."""
    x = int(x)
    for m in (512, 256, 128):
        if x >= m:
            return (x // m) * m
    return max((x // 8) * 8, 8)


def _device_info():
    """(physical VMEM bytes per TensorCore, TensorCores per chip)."""
    try:
        kind = jax.devices()[0].device_kind.lower()
    except Exception:  # pragma: no cover - defensive
        kind = ""
    if "v7" in kind:
        return 64 * 2**20, 2
    if "v2" in kind or "v3" in kind:
        return 16 * 2**20, 1
    if any(g in kind for g in ("v4", "v5", "v6")):
        return 128 * 2**20, 1
    return 64 * 2**20, 1  # unknown: be conservative


_TM_CAP = 2048  # keep grids from degenerating into one giant row tile


def _select_tiles(N8, E_p, F_p, dsize, budget, num_cores):
    """Pick (tm, tf, weights_resident) for the padded problem."""
    # ---- Fast path: both weight matrices resident in VMEM (tf == F_p). ----
    # Constant block index -> DMA'd exactly once; still count double buffers
    # (conservative w.r.t. what the pipeliner allocates).
    w_bytes = 2 * (2 * E_p * F_p + 8 * F_p + 8 * E_p) * dsize
    if w_bytes <= budget // 2:
        # per-row-tile bytes: x/out double-buffered + transient f32 hidden +
        # transient f32 second-matmul result.
        per_row = 4 * E_p * dsize + 4 * F_p + 4 * E_p
        tm = _nice_tile(min(max(budget - w_bytes, 0) // per_row, N8, _TM_CAP))
        if tm >= min(128, N8):
            # >= 2 row tiles feeds both v7x TensorCores and overlaps the x/out
            # DMAs with MXU work (weights are loaded once either way).
            if N8 >= 16 and -(-N8 // tm) < 2:
                tm = max(_round_up(-(-N8 // 2), 8), 8)
            return tm, F_p, True

    # ---- Streaming path: tile F; grow tm first (weight-reuse lever). ----
    best_tm, best_tf = 8, min(512, F_p)
    for tf in (512, 256, 128):
        tf = min(tf, F_p)
        fixed = 2 * (2 * E_p * tf + 8 * tf + 8 * E_p) * dsize
        per_row = 4 * E_p * dsize + 4 * E_p + 4 * tf  # x/out dbl-buf + acc + hidden
        tm = _nice_tile(min(max(budget - fixed, 0) // per_row, N8, _TM_CAP))
        if tm > best_tm:
            best_tm, best_tf = tm, tf
        if tm >= 512:  # enough arithmetic intensity; keep the larger tf
            break
    tm, tf = best_tm, best_tf
    # On v7x keep both TensorCores busy even though it re-streams weights twice.
    if num_cores >= 2 and N8 >= 16 and -(-N8 // tm) < 2:
        tm = max(_round_up(-(-N8 // 2), 8), 8)
    return tm, tf, False


def _ffn_kernel_resident(x_ref, w1_ref, b1_ref, w2_ref, b2_ref, o_ref, *,
                         bf16_compute):
    # x_ref: (tm, E_p)   w1_ref: (E_p, F_p)  b1_ref: (1, F_p)
    # w2_ref: (F_p, E_p) b2_ref: (1, E_p)    o_ref:  (tm, E_p)
    x, w1, w2 = x_ref[...], w1_ref[...], w2_ref[...]
    if bf16_compute and x.dtype == jnp.float32:
        x, w1, w2 = (v.astype(jnp.bfloat16) for v in (x, w1, w2))
    h = jnp.dot(x, w1, preferred_element_type=jnp.float32)
    h = jnp.maximum(h + b1_ref[...].astype(jnp.float32), 0.0)
    # Dropout (eval mode) == identity.
    # TODO(synk): training-mode dropout via pltpu.prng_seed/prng_random_bits.
    out = jnp.dot(h.astype(w2.dtype), w2, preferred_element_type=jnp.float32)
    o_ref[...] = (out + b2_ref[...].astype(jnp.float32)).astype(o_ref.dtype)


def _ffn_kernel_tiled(x_ref, w1_ref, b1_ref, w2_ref, b2_ref, o_ref, acc_ref, *,
                      bf16_compute):
    # x_ref:  (tm, E_p)   w1_ref: (E_p, tf)  b1_ref: (1, tf)
    # w2_ref: (tf, E_p)   b2_ref: (1, E_p)   o_ref:  (tm, E_p)
    # acc_ref: (tm, E_p) f32 scratch, resident across the F-reduction axis.
    j = pl.program_id(1)

    @pl.when(j == 0)
    def _init():
        # Fold b2 into the accumulator init (saves an epilogue VPU pass).
        acc_ref[...] = jnp.broadcast_to(
            b2_ref[...].astype(jnp.float32), acc_ref.shape)

    x, w1, w2 = x_ref[...], w1_ref[...], w2_ref[...]
    if bf16_compute and x.dtype == jnp.float32:
        x, w1, w2 = (v.astype(jnp.bfloat16) for v in (x, w1, w2))
    h = jnp.dot(x, w1, preferred_element_type=jnp.float32)
    h = jnp.maximum(h + b1_ref[...].astype(jnp.float32), 0.0)
    # Dropout (eval mode) == identity.
    acc_ref[...] += jnp.dot(h.astype(w2.dtype), w2,
                            preferred_element_type=jnp.float32)

    @pl.when(j == pl.num_programs(1) - 1)
    def _finalize():
        o_ref[...] = acc_ref[...].astype(o_ref.dtype)


@functools.partial(jax.jit, static_argnames=("tm", "tf", "bf16_compute"))
def _feed_forward_impl(x, w1, b1, w2, b2, *, tm, tf, bf16_compute):
    B, S, E = x.shape
    F = w1.shape[1]
    N = B * S
    dsize = jnp.dtype(x.dtype).itemsize

    physical_vmem, num_cores = _device_info()
    budget = int(physical_vmem * 0.8)  # ~20% headroom for Mosaic internals

    # Lane/sublane-aligned padded extents.
    E_p = _round_up(E, 128)
    F_p0 = _round_up(F, 128)
    N8 = _round_up(N, 8)

    auto_tm, auto_tf, resident = _select_tiles(N8, E_p, F_p0, dsize, budget,
                                               num_cores)
    if tf is not None:
        tf = min(_round_up(tf, 128), F_p0)
        resident = tf >= F_p0
    else:
        tf = auto_tf
    tm = auto_tm if tm is None else max(_round_up(min(tm, N8), 8), 8)
    if resident:
        tf = F_p0

    F_p = _round_up(F_p0, tf)
    N_p = _round_up(N8, tm)
    n_row_tiles = N_p // tm
    n_f_tiles = F_p // tf

    # HBM-side padding only when needed (aligned shapes pay nothing extra).
    x2 = x.reshape(N, E)
    if N_p != N or E_p != E:
        x2 = jnp.pad(x2, ((0, N_p - N), (0, E_p - E)))
    w1_p = w1 if (E_p == E and F_p == F) else jnp.pad(
        w1, ((0, E_p - E), (0, F_p - F)))
    w2_p = w2 if (E_p == E and F_p == F) else jnp.pad(
        w2, ((0, F_p - F), (0, E_p - E)))
    b1_p = b1.reshape(1, -1)
    if F_p != F:
        b1_p = jnp.pad(b1_p, ((0, 0), (0, F_p - F)))
    b2_p = b2.reshape(1, -1)
    if E_p != E:
        b2_p = jnp.pad(b2_p, ((0, 0), (0, E_p - E)))

    if resident:
        footprint = (2 * (2 * E_p * F_p + 8 * F_p + 8 * E_p) * dsize
                     + 4 * tm * E_p * dsize + tm * F_p * 4 + tm * E_p * 4)
        grid = (n_row_tiles,)
        in_specs = [
            pl.BlockSpec((tm, E_p), lambda i: (i, 0)),    # x row tile
            pl.BlockSpec((E_p, F_p), lambda i: (0, 0)),   # w1 (VMEM-resident)
            pl.BlockSpec((1, F_p), lambda i: (0, 0)),     # b1 (VMEM-resident)
            pl.BlockSpec((F_p, E_p), lambda i: (0, 0)),   # w2 (VMEM-resident)
            pl.BlockSpec((1, E_p), lambda i: (0, 0)),     # b2 (VMEM-resident)
        ]
        out_specs = pl.BlockSpec((tm, E_p), lambda i: (i, 0))
        scratch_shapes = []
        dim_sem = ("parallel",)
        kernel = functools.partial(_ffn_kernel_resident,
                                   bf16_compute=bf16_compute)
        bytes_accessed = (2 * N_p * E_p + 2 * E_p * F_p + F_p + E_p) * dsize
    else:
        footprint = (2 * (2 * E_p * tf + 8 * tf + 8 * E_p) * dsize
                     + 4 * tm * E_p * dsize + tm * E_p * 4 + tm * tf * 4)
        grid = (n_row_tiles, n_f_tiles)
        in_specs = [
            pl.BlockSpec((tm, E_p), lambda i, j: (i, 0)),  # x row tile
            pl.BlockSpec((E_p, tf), lambda i, j: (0, j)),  # w1 F-slab
            pl.BlockSpec((1, tf), lambda i, j: (0, j)),    # b1 F-slab
            pl.BlockSpec((tf, E_p), lambda i, j: (j, 0)),  # w2 F-slab
            pl.BlockSpec((1, E_p), lambda i, j: (0, 0)),   # b2
        ]
        out_specs = pl.BlockSpec((tm, E_p), lambda i, j: (i, 0))
        scratch_shapes = [pltpu.VMEM((tm, E_p), jnp.float32)]
        dim_sem = ("parallel", "arbitrary")
        kernel = functools.partial(_ffn_kernel_tiled, bf16_compute=bf16_compute)
        bytes_accessed = (2 * N_p * E_p * dsize
                          + n_row_tiles * (2 * E_p * F_p + F_p + E_p) * dsize)

    vmem_limit = int(min(physical_vmem, max(footprint * 5 // 4, 32 * 2**20)))

    cost = pl.CostEstimate(
        flops=4 * N_p * E_p * F_p,  # two matmuls on the padded problem
        transcendentals=0,
        bytes_accessed=int(bytes_accessed),
    )

    out_p = pl.pallas_call(
        kernel,
        out_shape=jax.ShapeDtypeStruct((N_p, E_p), x.dtype),
        grid_spec=pltpu.PrefetchScalarGridSpec(
            num_scalar_prefetch=0,
            grid=grid,
            in_specs=in_specs,
            out_specs=out_specs,
            scratch_shapes=scratch_shapes,
        ),
        compiler_params=pltpu.CompilerParams(
            dimension_semantics=dim_sem,
            vmem_limit_bytes=vmem_limit,
        ),
        cost_estimate=cost,
    )(x2, w1_p, b1_p, w2_p, b2_p)

    if N_p == N and E_p == E:
        return out_p.reshape(B, S, E)
    return out_p[:N, :E].reshape(B, S, E)


def feed_forward(x, w1, b1, w2, b2, *, tm=None, tf=None, bf16_compute=False):
    """FeedForward forward: relu(x @ w1 + b1) @ w2 + b2, x: [B, S, E].

    Weights stored transposed vs. PyTorch (w1: [E, F], w2: [F, E]). Tile sizes
    are auto-selected per TPU generation; tm / tf override if given.
    bf16_compute=True casts f32 operands to bf16 inside the kernel (f32 acc).
    """
    return _feed_forward_impl(x, w1, b1, w2, b2, tm=tm, tf=tf,
                              bf16_compute=bf16_compute)


def _ref_feed_forward(x, w1, b1, w2, b2):
    h = jnp.maximum(x @ w1 + b1.reshape(1, -1), 0.0)
    return h @ w2 + b2.reshape(1, -1)


def _make_params(key, E, F, dtype=jnp.float32):
    kw1, kb1, kw2, kb2 = jax.random.split(key, 4)
    bound1 = 1.0 / jnp.sqrt(E)
    bound2 = 1.0 / jnp.sqrt(F)
    w1 = jax.random.uniform(kw1, (E, F), jnp.float32, -bound1, bound1)
    b1 = jax.random.uniform(kb1, (1, F), jnp.float32, -bound1, bound1)
    w2 = jax.random.uniform(kw2, (F, E), jnp.float32, -bound2, bound2)
    b2 = jax.random.uniform(kb2, (1, E), jnp.float32, -bound2, bound2)
    return (w1.astype(dtype), b1.astype(dtype), w2.astype(dtype),
            b2.astype(dtype))


if __name__ == "__main__":
    root = jax.random.PRNGKey(0)

    # ---- Small shape consistent with the module (B=2, S=8, E=32, d_ff=64) ----
    kx, kp = jax.random.split(root, 2)
    B, S, E, F = 2, 8, 32, 64
    w1, b1, w2, b2 = _make_params(kp, E, F)
    x = jax.random.normal(kx, (B, S, E), jnp.float32)

    out = jax.block_until_ready(feed_forward(x, w1, b1, w2, b2))
    ref = _ref_feed_forward(x.reshape(B * S, E), w1, b1, w2, b2).reshape(B, S, E)
    assert out.shape == (B, S, E)
    assert jnp.allclose(out, ref, atol=1e-5, rtol=1e-5), "f32 small mismatch"

    # ---- Moderate aligned shape: weights-resident fast path, no padding ----
    kx2, kp2 = jax.random.split(jax.random.fold_in(root, 1), 2)
    B2, S2, E2, F2 = 2, 512, 256, 1024
    w1b, b1b, w2b, b2b = _make_params(kp2, E2, F2)
    x2 = jax.random.normal(kx2, (B2, S2, E2), jnp.float32)
    ref2 = _ref_feed_forward(
        x2.reshape(B2 * S2, E2), w1b, b1b, w2b, b2b).reshape(B2, S2, E2)

    out2 = jax.block_until_ready(feed_forward(x2, w1b, b1b, w2b, b2b))
    assert jnp.allclose(out2, ref2, atol=2e-2, rtol=2e-2), "f32 resident mismatch"

    # ---- Force the F-tiled streaming path (tf < F) on the same shape ----
    out3 = jax.block_until_ready(feed_forward(x2, w1b, b1b, w2b, b2b, tf=256))
    assert jnp.allclose(out3, ref2, atol=2e-2, rtol=2e-2), "f32 tiled mismatch"

    # ---- bf16 inputs/weights (MXU bf16 compute, f32 accumulation) ----
    xb = x.astype(jnp.bfloat16)
    out_bf = jax.block_until_ready(
        feed_forward(xb, w1.astype(jnp.bfloat16), b1.astype(jnp.bfloat16),
                     w2.astype(jnp.bfloat16), b2.astype(jnp.bfloat16)))
    assert jnp.allclose(out_bf.astype(jnp.float32), ref, atol=1e-1, rtol=1e-1), \
        "bf16 mismatch"

    # ---- Opt-in bf16 compute on f32 data (3-4x MXU on v6e/v7x) ----
    out4 = jax.block_until_ready(
        feed_forward(x2, w1b, b1b, w2b, b2b, bf16_compute=True))
    assert jnp.allclose(out4, ref2, atol=5e-2, rtol=5e-2), "bf16-compute mismatch"

    print("KERNEL_OK")
</pallas_src>

<mosaic_0001>
module attributes {stable_mosaic.version = 11 : i64} {
  func.func @_ffn_kernel_resident(%arg0: i32, %arg1: memref<8x128xf32, #tpu.memory_space<vmem>>, %arg2: memref<128x128xf32, #tpu.memory_space<vmem>>, %arg3: memref<1x128xf32, #tpu.memory_space<vmem>>, %arg4: memref<128x128xf32, #tpu.memory_space<vmem>>, %arg5: memref<1x128xf32, #tpu.memory_space<vmem>>, %arg6: memref<8x128xf32, #tpu.memory_space<vmem>>) attributes {dimension_semantics = [#tpu.dimension_semantics<parallel>], iteration_bounds = array<i64: 2>, scalar_prefetch = 0 : i64, scratch_operands = 0 : i64, tpu.core_type = #tpu.core_type<tc>, window_params = [{transform_indices = @transform_0, window_bounds = array<i64: 8, 128>}, {pipeline_mode = #tpu.pipeline_mode<synchronous>, transform_indices = @transform_1, window_bounds = array<i64: 128, 128>}, {pipeline_mode = #tpu.pipeline_mode<synchronous>, transform_indices = @transform_2, window_bounds = array<i64: 1, 128>}, {pipeline_mode = #tpu.pipeline_mode<synchronous>, transform_indices = @transform_3, window_bounds = array<i64: 128, 128>}, {pipeline_mode = #tpu.pipeline_mode<synchronous>, transform_indices = @transform_4, window_bounds = array<i64: 1, 128>}, {transform_indices = @transform_5, window_bounds = array<i64: 8, 128>}]} {
    %c0 = arith.constant 0 : index
    %c0_0 = arith.constant 0 : index
    %0 = vector.load %arg1[%c0, %c0_0] : memref<8x128xf32, #tpu.memory_space<vmem>>, vector<8x128xf32>
    %c0_1 = arith.constant 0 : index
    %c0_2 = arith.constant 0 : index
    %1 = vector.load %arg2[%c0_1, %c0_2] : memref<128x128xf32, #tpu.memory_space<vmem>>, vector<128x128xf32>
    %c0_3 = arith.constant 0 : index
    %c0_4 = arith.constant 0 : index
    %2 = vector.load %arg4[%c0_3, %c0_4] : memref<128x128xf32, #tpu.memory_space<vmem>>, vector<128x128xf32>
    %cst = arith.constant dense<0.000000e+00> : vector<8x128xf32>
    %3 = tpu.matmul %0, %1, %cst {dimension_numbers = #tpu.dot_dimension_numbers<[1], [0], [0], [1], [0, 0, 1, 1], [], []>} : vector<8x128xf32>, vector<128x128xf32>, vector<8x128xf32> -> vector<8x128xf32>
    %c0_5 = arith.constant 0 : index
    %c0_6 = arith.constant 0 : index
    %4 = vector.load %arg3[%c0_5, %c0_6] : memref<1x128xf32, #tpu.memory_space<vmem>>, vector<1x128xf32>
    %5 = vector.broadcast %4 : vector<1x128xf32> to vector<8x128xf32>
    %6 = arith.addf %3, %5 : vector<8x128xf32>
    %cst_7 = arith.constant 0.000000e+00 : f32
    %7 = vector.broadcast %cst_7 : f32 to vector<8x128xf32>
    %8 = arith.maximumf %6, %7 : vector<8x128xf32>
    %cst_8 = arith.constant dense<0.000000e+00> : vector<8x128xf32>
    %9 = tpu.matmul %8, %2, %cst_8 {dimension_numbers = #tpu.dot_dimension_numbers<[1], [0], [0], [1], [0, 0, 1, 1], [], []>} : vector<8x128xf32>, vector<128x128xf32>, vector<8x128xf32> -> vector<8x128xf32>
    %c0_9 = arith.constant 0 : index
    %c0_10 = arith.constant 0 : index
    %10 = vector.load %arg5[%c0_9, %c0_10] : memref<1x128xf32, #tpu.memory_space<vmem>>, vector<1x128xf32>
    %11 = vector.broadcast %10 : vector<1x128xf32> to vector<8x128xf32>
    %12 = arith.addf %9, %11 : vector<8x128xf32>
    %c0_11 = arith.constant 0 : index
    %c0_12 = arith.constant 0 : index
    %13 = vector.load %arg6[%c0_11, %c0_12] : memref<8x128xf32, #tpu.memory_space<vmem>>, vector<8x128xf32>
    tpu.vector_store %arg6[%c0_11, %c0_12], %12 {strides = array<i32>} : memref<8x128xf32, #tpu.memory_space<vmem>>, vector<8x128xf32>,
    return
  }
  func.func @transform_0(%arg0: i32) -> (i32, i32) {
    %c0_i32 = arith.constant 0 : i32
    %c0_i32_0 = arith.constant 0 : i32
    return %arg0, %c0_i32 : i32, i32
  }
  func.func @transform_1(%arg0: i32) -> (i32, i32) {
    %c0_i32 = arith.constant 0 : i32
    %c0_i32_0 = arith.constant 0 : i32
    %c0_i32_1 = arith.constant 0 : i32
    return %c0_i32, %c0_i32_0 : i32, i32
  }
  func.func @transform_2(%arg0: i32) -> (i32, i32) {
    %c0_i32 = arith.constant 0 : i32
    %c0_i32_0 = arith.constant 0 : i32
    %c0_i32_1 = arith.constant 0 : i32
    return %c0_i32, %c0_i32_0 : i32, i32
  }
  func.func @transform_3(%arg0: i32) -> (i32, i32) {
    %c0_i32 = arith.constant 0 : i32
    %c0_i32_0 = arith.constant 0 : i32
    %c0_i32_1 = arith.constant 0 : i32
    return %c0_i32, %c0_i32_0 : i32, i32
  }
  func.func @transform_4(%arg0: i32) -> (i32, i32) {
    %c0_i32 = arith.constant 0 : i32
    %c0_i32_0 = arith.constant 0 : i32
    %c0_i32_1 = arith.constant 0 : i32
    return %c0_i32, %c0_i32_0 : i32, i32
  }
  func.func @transform_5(%arg0: i32) -> (i32, i32) {
    %c0_i32 = arith.constant 0 : i32
    %c0_i32_0 = arith.constant 0 : i32
    return %arg0, %c0_i32 : i32, i32
  }
}

</mosaic_0001>

<bundles_post_ra>
// kernel: _feed_forward_impl.1
= control target key start
LH: loop header
LB: loop body
LE: loop exit
PB: predicated region body
PF: predicated region fallthrough
CT: control target
= control target key end

     0   :  { %s677_s18 = smov 0   ;;  %s819_s0 = inlined_call_operand.vmem [shape: f32[16,128], index: 0, kind: input, shape index: {}]   ;;  %s820_s1 = inlined_call_operand.vmem [shape: f32[128,128], index: 1, kind: input, shape index: {}]   ;;  %s821_s2 = inlined_call_operand.vmem [shape: f32[1,128], index: 2, kind: input, shape index: {}]   ;;  %s822_s3 = inlined_call_operand.vmem [shape: f32[128,128], index: 3, kind: input, shape index: {}]   ;;  %s823_s4 = inlined_call_operand.vmem [shape: f32[1,128], index: 4, kind: input, shape index: {}]   ;;  %s824_s5 = inlined_call_operand.vmem [shape: f32[16,128], index: 5, kind: output, shape index: {}]  }
   0x1 LB: > { %s462_s19 = sadd.s32 4294967295, %s642_s18   ;;  %p466_p0 = scmp.ge.s32.totalorder %s642_s18, 1  ;;  %s642_s18 = sphi %s677_s18, %s15_s18  }
   0x2   : > { %p186_p1 = scmp.lt.s32.totalorder %s642_s18, 3 }
   0x4   : > { %p187_p2 = pnand %p466_p0, %p186_p1 }
   0x5   : > { %v221_v0 = vld [vmem:[%s820_s1] sm:$0xff] (!%p187_p2)  ;;  %v222_v1 = vld [vmem:[%s820_s1 + $0x8] sm:$0xff] (!%p187_p2)  ;;  %v223_v2 = vld [vmem:[%s820_s1 + $0x10] sm:$0xff] (!%p187_p2)  ;;  %v644_v3 = vmov (!%p187_p2), 0.0|0.0   ;;  %vm645_vm0 = vmmov (!%p187_p2), 0   ;;  %v646_v6 = vmov (!%p187_p2), 0.0  }
   0x6   : > { %190 = sbr.rel (%p187_p2) target bundleno = 470 (0x1d6), region = 40  ;;  %577 = vmatprep.subr.bf16.mxu0 (!%p187_p2), %v644_v3  ;;  %v578_v4 = vpack.c.bf16 (!%p187_p2), %v222_v1, %v221_v0  ;;  %v224_v5 = vld [vmem:[%s820_s1 + $0x18] sm:$0xff] (!%p187_p2)  ;;  %539 = vmatprep.mubr.msk.f32.mxu0 (!%p187_p2), %vm645_vm0, %v646_v6  ;;  %v225_v8 = vld [vmem:[%s820_s1 + $0x20] sm:$0xff] (!%p187_p2)  ;;  %v226_v9 = vld [vmem:[%s820_s1 + $0x28] sm:$0xff] (!%p187_p2)  ;;  %p212_p3 = scmp.lt.s32.totalorder (!%p187_p2), %s462_s19, 1 }
   0x7   : > { %601 = vmatprep.subr.bf16.mxu1 (!%p187_p2), %v644_v3  ;;  %574 = vmatprep.mubr.msk.f32.mxu1 (!%p187_p2), %vm645_vm0, %v646_v6  ;;  %v581_v7 = vpack.c.bf16 (!%p187_p2), %v224_v5, %v223_v2  ;;  %v237_v10 = vld [vmem:[%s822_s3] sm:$0xff] (!%p187_p2)  ;;  %v238_v11 = vld [vmem:[%s822_s3 + $0x8] sm:$0xff] (!%p187_p2)  ;;  %v239_v13 = vld [vmem:[%s822_s3 + $0x10] sm:$0xff] (!%p187_p2)  ;;  %v584_v15 = vpack.c.bf16 (!%p187_p2), %v226_v9, %v225_v8 }
   0x8   : > { %579 = vmatpush3.bf16.msra.mxu0 (!%p187_p2), %v578_v4  ;;  %v602_v12 = vpack.c.bf16 (!%p187_p2), %v238_v11, %v237_v10  ;;  %v240_v14 = vld [vmem:[%s822_s3 + $0x18] sm:$0xff] (!%p187_p2)  ;;  %v227_v16 = vld [vmem:[%s820_s1 + $0x30] sm:$0xff] (!%p187_p2)  ;;  %v241_v19 = vld [vmem:[%s822_s3 + $0x20] sm:$0xff] (!%p187_p2) }
   0x9   : > { %580 = vmatprep.subr.bf16.mxu0 (!%p187_p2), %v644_v3  ;;  %v228_v17 = vld [vmem:[%s820_s1 + $0x38] sm:$0xff] (!%p187_p2)  ;;  %v605_v18 = vpack.c.bf16 (!%p187_p2), %v240_v14, %v239_v13  ;;  %v242_v20 = vld [vmem:[%s822_s3 + $0x28] sm:$0xff] (!%p187_p2)  ;;  %v229_v22 = vld [vmem:[%s820_s1 + $0x40] sm:$0xff] (!%p187_p2) }
   0xa   : > { %603 = vmatpush3.bf16.msra.mxu1 (!%p187_p2), %v602_v12  ;;  %v587_v21 = vpack.c.bf16 (!%p187_p2), %v228_v17, %v227_v16  ;;  %v230_v23 = vld [vmem:[%s820_s1 + $0x48] sm:$0xff] (!%p187_p2)  ;;  %v608_v24 = vpack.c.bf16 (!%p187_p2), %v242_v20, %v241_v19  ;;  %v243_v25 = vld [vmem:[%s822_s3 + $0x30] sm:$0xff] (!%p187_p2)  ;;  %v244_v26 = vld [vmem:[%s822_s3 + $0x38] sm:$0xff] (!%p187_p2) }
   0xb   : > { %604 = vmatprep.subr.bf16.mxu1 (!%p187_p2), %v644_v3  ;;  %v590_v27 = vpack.c.bf16 (!%p187_p2), %v230_v23, %v229_v22  ;;  %v231_v28 = vld [vmem:[%s820_s1 + $0x50] sm:$0xff] (!%p187_p2)  ;;  %v232_v29 = vld [vmem:[%s820_s1 + $0x58] sm:$0xff] (!%p187_p2)  ;;  %v611_v30 = vpack.c.bf16 (!%p187_p2), %v244_v26, %v243_v25  ;;  %v245_v31 = vld [vmem:[%s822_s3 + $0x40] sm:$0xff] (!%p187_p2) }
   0xc   : > { %582 = vmatpush3.bf16.msra.mxu0 (!%p187_p2), %v581_v7  ;;  %v246_v32 = vld [vmem:[%s822_s3 + $0x48] sm:$0xff] (!%p187_p2)  ;;  %v593_v33 = vpack.c.bf16 (!%p187_p2), %v232_v29, %v231_v28  ;;  %v233_v34 = vld [vmem:[%s820_s1 + $0x60] sm:$0xff] (!%p187_p2)  ;;  %v247_v37 = vld [vmem:[%s822_s3 + $0x50] sm:$0xff] (!%p187_p2) }
   0xd   : > { %583 = vmatprep.subr.bf16.mxu0 %v644_v3  ;;  %v234_v35 = vld [vmem:[%s820_s1 + $0x68] sm:$0xff]  ;;  %v614_v36 = vpack.c.bf16 %v246_v32, %v245_v31  ;;  %s826_s19 = smov (!%p212_p3, %s462_s19), 1  ;;  %v248_v38 = vld [vmem:[%s822_s3 + $0x58] sm:$0xff]  ;;  %v235_v40 = vld [vmem:[%s820_s1 + $0x70] sm:$0xff] }
   0xe   : > { %606 = vmatpush3.bf16.msra.mxu1 %v605_v18  ;;  %v596_v39 = vpack.c.bf16 %v234_v35, %v233_v34  ;;  %v236_v41 = vld [vmem:[%s820_s1 + $0x78] sm:$0xff]  ;;  %v617_v42 = vpack.c.bf16 %v248_v38, %v247_v37  ;;  %s467_s30 = sshll.u32 %s826_s19, 3  ;;  %v249_v43 = vld [vmem:[%s822_s3 + $0x60] sm:$0xff]  ;;  %v250_v44 = vld [vmem:[%s822_s3 + $0x68] sm:$0xff] }
   0xf   : > { %607 = vmatprep.subr.bf16.mxu1 %v644_v3  ;;  %v599_v45 = vpack.c.bf16 %v236_v41, %v235_v40  ;;  %s215_s12 = scalar_lea.vmem %s819_s0, %s467_s30  ;;  %v620_v46 = vpack.c.bf16 %v250_v44, %v249_v43  ;;  %v251_v48 = vld [vmem:[%s822_s3 + $0x70] sm:$0xff]  ;;  %v252_v49 = vld [vmem:[%s822_s3 + $0x78] sm:$0xff]  ;;  %v469_v51 = vld [vmem:[%s821_s2] ss:$0 sm:$0xff]  ;;  %s219_s24 = scalar_lea.vmem %s824_s5, %s467_s30 }
  0x10   : > { %585 = vmatpush3.bf16.msra.mxu0 %v584_v15  ;;  %v220_v47 = vld [vmem:[%s215_s12] sm:$0xff]  ;;  %v623_v50 = vpack.c.bf16 %v252_v49, %v251_v48 }
  0x11   : > { %586 = vmatprep.subr.bf16.mxu0 %v644_v3  ;;  %v470_v56 = vld [vmem:[%s823_s4] ss:$0 sm:$0xff] }
  0x12   : > { %609 = vmatpush3.bf16.msra.mxu1 %v608_v24 }
  0x13   : > { %610 = vmatprep.subr.bf16.mxu1 %v644_v3 }
  0x14   : > { %588 = vmatpush3.bf16.msra.mxu0 %v587_v21 }
  0x15   : > { %589 = vmatprep.subr.bf16.mxu0 %v644_v3 }
  0x16   : > { %612 = vmatpush3.bf16.msra.mxu1 %v611_v30 }
  0x17   : > { %613 = vmatprep.subr.bf16.mxu1 %v644_v3 }
  0x18   : > { %591 = vmatpush3.bf16.msra.mxu0 %v590_v27 }
  0x19   : > { %592 = vmatprep.subr.bf16.mxu0 %v644_v3 }
  0x1a   : > { %615 = vmatpush3.bf16.msra.mxu1 %v614_v36 }
  0x1b   : > { %616 = vmatprep.subr.bf16.mxu1 %v644_v3 }
  0x1c   : > { %594 = vmatpush3.bf16.msra.mxu0 %v593_v33 }
  0x1d   : > { %595 = vmatprep.subr.bf16.mxu0 %v644_v3 }
  0x1e   : > { %618 = vmatpush3.bf16.msra.mxu1 %v617_v42 }
  0x1f   : > { %619 = vmatprep.subr.bf16.mxu1 %v644_v3 }
  0x20   : > { %597 = vmatpush3.bf16.msra.mxu0 %v596_v39 }
  0x21   : > { %598 = vmatprep.subr.bf16.mxu0 %v644_v3 }
  0x22   : > { %621 = vmatpush3.bf16.msra.mxu1 %v620_v46 }
  0x23   : > { %622 = vmatprep.subr.bf16.mxu1 %v644_v3 }
  0x24   : > { %600 = vmatpush3.bf16.msra.mxu0 %v599_v45 }
  0x26   : > { %624 = vmatpush3.bf16.msra.mxu1 %v623_v50 }
  0x27   : > { %540 = vmatmul.mubr.f32.vlgmr.msra.gmra.mrb[0].mxu0 %v220_v47 }
  0xfa   : > { %v326_v52 = vpop.f32.mrb[0].mxu0 }
  0xfb   : > { %v327_v53 = vadd.f32 %v469_v51, %v326_v52  ;;  %v541_v54 = vpop.f32.mrb[1].mxu0 }
  0xfd   : > { %v330_v55 = vmax.f32 %v327_v53, 0.0 }
  0xff   : > { %575 = vmatmul.mubr.f32.vlgmr.msra.gmra.mrb[0].mxu1 %v330_v55 }
 0x1d2   : > { %v404_v57 = vpop.f32.mrb[0].mxu1 }
 0x1d3   : > { %v405_v58 = vadd.f32 %v470_v56, %v404_v57  ;;  %v576_v59 = vpop.f32.mrb[1].mxu1 }
 0x1d5   : > { %408 = vst [vmem:[%s219_s24] sm:$0xff] %v405_v58 }
 0x1d6 PF: > { %s15_s18 = sadd.s32 1, %s642_s18  }
 0x1d7   : > { %p12_p4 = scmp.ge.s32.totalorder %s15_s18, 4  }
 0x1d9   :  { %14 = sbr.rel (!%p12_p4) target bundleno = 1 (0x1), region = 70 }

</bundles_post_ra>
